<compile_context>
chip_gen: v7x
topology: tpu7x:2x2x1
jax: 0.10.0
libtpu: 0.0.40
codegen_flags: <defaults>
</compile_context>

<pallas_src>
import functools

import jax
import jax.numpy as jnp
from jax.experimental import pallas as pl
from jax.experimental.pallas import tpu as pltpu

CLIP_MIN = 1e-15
CLIP_MAX = 1.0 - 1e-15


# ----------------------------------------------------------------------------
# Pallas kernel: the whole MMOE hot path in one kernel, all operands in VMEM.
# ----------------------------------------------------------------------------
def mmoe_kernel(
    x_ref,                        # (TB, D_in)
    W1g_ref, b1g_ref,             # fused expert-L1 + gates: (D_in, E*H1 + T*E), (1, E*H1 + T*E)
    W2w_ref, b2w_ref,             # block-diag expert L2 tiled over tasks: (E*H1, T*E*H2), (1, T*E*H2)
    expand_ref,                   # gate expander: (T*E, T*E*H2), constant 0/1
    onesden_ref,                  # softmax denominator expander: (T*E, T*E*H2), constant 0/1
    tW1_ref, tb1_ref,             # fused towers layer 1: (T*E*H2, T*TH), (1, T*TH)
    tWo_ref, tbo_ref,             # fused tower outputs: (T*TH, T), (1, T)
    out_ref,                      # (TB, T)
    *, eh1,                       # static: n_expert * H1 (split point for h1 / gate logits)
):
    W1g = W1g_ref[...]
    cdt = W1g.dtype                                   # compute dtype (bf16 or f32)
    x = x_ref[...].astype(cdt)

    # ---- fused expert layer 1 + gate logits: one MXU push, f32 accumulate ---
    h1g = jnp.dot(x, W1g, preferred_element_type=jnp.float32) + b1g_ref[...]
    h1 = jnp.maximum(h1g[:, :eh1], 0.0)               # (TB, E*H1)  (vreg-aligned slice)
    gl = h1g[:, eh1:]                                  # (TB, T*E)   gate logits (f32)

    # ---- expert layer 2, task-tiled to full lane width -----------------------
    h2 = jnp.dot(h1.astype(cdt), W2w_ref[...],
                 preferred_element_type=jnp.float32) + b2w_ref[...]
    h2 = jnp.maximum(h2, 0.0)                          # (TB, T*E*H2)

    # ---- packed per-task softmax over experts (matmul formulation) -----------
    # Subtracting the per-row global max over all T*E logits is a valid per-task shift.
    e = jnp.exp(gl - jnp.max(gl, axis=-1, keepdims=True)).astype(cdt)      # (TB, T*E)
    num = jnp.dot(e, expand_ref[...], preferred_element_type=jnp.float32)  # (TB, T*E*H2)
    den = jnp.dot(e, onesden_ref[...], preferred_element_type=jnp.float32) # (TB, T*E*H2)
    weighted = h2 * num * pl.reciprocal(den, approx=True)                  # gate-weighted experts

    # ---- towers (fused across tasks, expert-sum folded into tW1) + prediction
    th = jnp.dot(weighted.astype(cdt), tW1_ref[...],
                 preferred_element_type=jnp.float32) + tb1_ref[...]
    th = jnp.maximum(th, 0.0)                          # (TB, T*TH)
    y = jnp.dot(th.astype(cdt), tWo_ref[...],
                preferred_element_type=jnp.float32) + tbo_ref[...]         # (TB, T)

    y = jax.nn.sigmoid(y)                              # classification tasks
    out_ref[...] = jnp.clip(y, CLIP_MIN, CLIP_MAX).astype(out_ref.dtype)   # single store


def _pick_batch_tile(B):
    # One big tile amortizes the ~0.35us per-grid-step overhead and MXU fill/drain.
    # Activations at TB=512 are well under 1 MiB, so VMEM is not the constraint.
    if B <= 512:
        return B
    for cand in (512, 448, 384, 320, 256, 192, 128, 64):
        if B % cand == 0:
            return cand
    return B


def mmoe_forward(embed_x, fused_params, *, batch_tile=None, vmem_limit_bytes=None):
    """Single pallas_call; batch tiled on a parallel grid axis, weights VMEM-resident."""
    B, d_in = embed_x.shape
    compute_dtype = fused_params[0].dtype
    x = embed_x.astype(compute_dtype)                 # bf16 input halves the x DMA bytes

    if batch_tile is None:
        batch_tile = _pick_batch_tile(B)
    assert B % batch_tile == 0, (B, batch_tile)
    assert batch_tile == B or batch_tile % 8 == 0, batch_tile
    grid = (B // batch_tile,)

    eh1 = fused_params[2].shape[0]                    # W2w rows = n_expert * H1
    n_task = fused_params[-1].shape[1]                # tbobig cols = n_task

    in_specs = [pl.BlockSpec((batch_tile, d_in), lambda i: (i, 0))]
    # Constant index maps -> weight blocks never change across grid steps (stay resident).
    # TODO(synk): single-buffer these (pl.Buffered(1)) + explicit vmem_limit_bytes when
    #             scaling to production sizes on v7x (64 MiB VMEM).
    in_specs += [pl.BlockSpec(p.shape, lambda i: (0, 0)) for p in fused_params]
    out_specs = pl.BlockSpec((batch_tile, n_task), lambda i: (i, 0))

    kernel = functools.partial(mmoe_kernel, eh1=eh1)
    return pl.pallas_call(
        kernel,
        out_shape=jax.ShapeDtypeStruct((B, n_task), jnp.float32),
        grid_spec=pltpu.PrefetchScalarGridSpec(
            num_scalar_prefetch=0,
            grid=grid,
            in_specs=in_specs,
            out_specs=out_specs,
        ),
        compiler_params=pltpu.CompilerParams(
            dimension_semantics=("parallel",),
            vmem_limit_bytes=vmem_limit_bytes,
        ),
    )(x, *fused_params)


# ----------------------------------------------------------------------------
# Parameter construction (deterministic, synthetic) + host-side fusion
# ----------------------------------------------------------------------------
def bn_fold(key, dim):
    """Return (scale, shift) folding eval-mode BatchNorm1d into an affine op."""
    k1, k2, k3, k4 = jax.random.split(key, 4)
    gamma = jax.random.uniform(k1, (1, dim), jnp.float32, 0.5, 1.5)
    beta = 0.1 * jax.random.normal(k2, (1, dim), jnp.float32)
    running_mean = 0.1 * jax.random.normal(k3, (1, dim), jnp.float32)
    running_var = jax.random.uniform(k4, (1, dim), jnp.float32, 0.5, 1.5)
    scale = gamma / jnp.sqrt(running_var + 1e-5)
    shift = beta - running_mean * scale
    return scale, shift


def linear_init(key, d_in, d_out):
    kw, kb = jax.random.split(key)
    bound = 1.0 / jnp.sqrt(d_in)
    W = jax.random.uniform(kw, (d_in, d_out), jnp.float32, -bound, bound)
    b = jax.random.uniform(kb, (1, d_out), jnp.float32, -bound, bound)
    return W, b


def build_raw_params(key, d_in, n_expert, n_task, expert_dims, tower_hidden):
    """Unfused per-expert / per-task params (used by the pure-JAX reference)."""
    H1, H2 = expert_dims
    TH = tower_hidden
    keys = jax.random.split(key, 2)

    eW1, eB1, eS1, eT1, eW2, eB2, eS2, eT2 = [], [], [], [], [], [], [], []
    ekeys = jax.random.split(keys[0], n_expert)
    for e in range(n_expert):
        k1, k2, k3, k4 = jax.random.split(ekeys[e], 4)
        w1, b1 = linear_init(k1, d_in, H1)
        s1, t1 = bn_fold(k2, H1)
        w2, b2 = linear_init(k3, H1, H2)
        s2, t2 = bn_fold(k4, H2)
        eW1.append(w1); eB1.append(b1); eS1.append(s1); eT1.append(t1)
        eW2.append(w2); eB2.append(b2); eS2.append(s2); eT2.append(t2)

    gW, gB, gS, gT = [], [], [], []
    tW1, tB1, tS1, tT1, tWo, tBo = [], [], [], [], [], []
    tkeys = jax.random.split(keys[1], n_task)
    for t in range(n_task):
        k1, k2, k3, k4, k5 = jax.random.split(tkeys[t], 5)
        gw, gb = linear_init(k1, d_in, n_expert)
        gs, gt = bn_fold(k2, n_expert)
        gW.append(gw); gB.append(gb); gS.append(gs); gT.append(gt)
        tw1, tb1 = linear_init(k3, H2, TH)
        ts1, tt1 = bn_fold(k4, TH)
        two, tbo = linear_init(k5, TH, 1)
        tW1.append(tw1); tB1.append(tb1); tS1.append(ts1); tT1.append(tt1)
        tWo.append(two); tBo.append(tbo)

    stack = lambda xs: jnp.stack(xs, axis=0)
    return (stack(eW1), stack(eB1), stack(eS1), stack(eT1),
            stack(eW2), stack(eB2), stack(eS2), stack(eT2),
            stack(gW), stack(gB), stack(gS), stack(gT),
            stack(tW1), stack(tB1), stack(tS1), stack(tT1),
            stack(tWo), stack(tBo))


def fuse_params(raw, n_expert, n_task, expert_dims, tower_hidden,
                compute_dtype=jnp.bfloat16):
    """One-time host-side transform: fold BN, lane-pack & block-diagonalize weights.

    Matmul operand weights are cast to `compute_dtype`; biases stay f32 (added to the
    f32 matmul accumulators inside the kernel).
    """
    (eW1, eB1, eS1, eT1, eW2, eB2, eS2, eT2,
     gW, gB, gS, gT, tW1, tB1, tS1, tT1, tWo, tBo) = raw
    H1, H2 = expert_dims
    TH = tower_hidden
    E, T = n_expert, n_task

    # Expert layer 1 (BN folded) + gates, concatenated along the output dim.
    W1f = jnp.concatenate([eW1[e] * eS1[e] for e in range(E)], axis=1)          # (D_in, E*H1)
    b1f = jnp.concatenate([eB1[e] * eS1[e] + eT1[e] for e in range(E)], axis=1)
    gWf = jnp.concatenate([gW[t] * gS[t] for t in range(T)], axis=1)            # (D_in, T*E)
    gbf = jnp.concatenate([gB[t] * gS[t] + gT[t] for t in range(T)], axis=1)
    W1g = jnp.concatenate([W1f, gWf], axis=1)                                   # (D_in, E*H1 + T*E)
    b1g = jnp.concatenate([b1f, gbf], axis=1)

    # Expert layer 2: block-diagonal (E*H1, E*H2), BN folded, tiled T times along columns
    # so the task replication of h2 is free (lane order = (t, e, h2)).
    W2bd = jnp.zeros((E * H1, E * H2), jnp.float32)
    for e in range(E):
        W2bd = W2bd.at[e * H1:(e + 1) * H1, e * H2:(e + 1) * H2].set(eW2[e] * eS2[e])
    b2f = jnp.concatenate([eB2[e] * eS2[e] + eT2[e] for e in range(E)], axis=1)
    W2w = jnp.concatenate([W2bd] * T, axis=1)                                   # (E*H1, T*E*H2)
    b2w = jnp.concatenate([b2f] * T, axis=1)                                    # (1, T*E*H2)

    # Constant gate expander: row (t*E+e) has ones over lanes [(t*E+e)*H2, ...+H2).
    expand = jnp.kron(jnp.eye(T * E, dtype=jnp.float32),
                      jnp.ones((1, H2), jnp.float32))                           # (T*E, T*E*H2)
    # Constant denominator expander: row (t*E+e) has ones over the whole task-t lane block.
    onesden = jnp.kron(jnp.eye(T, dtype=jnp.float32),
                       jnp.ones((E, E * H2), jnp.float32))                      # (T*E, T*E*H2)

    # Tower layer 1, fused across tasks with the expert-sum folded in:
    # rows grouped in (t, e) blocks of H2, columns in task blocks of TH.
    tW1big = jnp.zeros((T * E * H2, T * TH), jnp.float32)
    for t in range(T):
        wt = tW1[t] * tS1[t]                                                    # (H2, TH), BN folded
        for e in range(E):
            r0 = (t * E + e) * H2
            tW1big = tW1big.at[r0:r0 + H2, t * TH:(t + 1) * TH].set(wt)
    tb1big = jnp.concatenate([tB1[t] * tS1[t] + tT1[t] for t in range(T)], axis=1)

    # Tower output layers fused into a single (T*TH, T) block-column matrix.
    tWobig = jnp.zeros((T * TH, T), jnp.float32)
    for t in range(T):
        tWobig = tWobig.at[t * TH:(t + 1) * TH, t:t + 1].set(tWo[t])
    tbobig = jnp.concatenate([tBo[t] for t in range(T)], axis=1)                # (1, T)

    cdt = compute_dtype
    return (W1g.astype(cdt), b1g,
            W2w.astype(cdt), b2w,
            expand.astype(cdt), onesden.astype(cdt),
            tW1big.astype(cdt), tb1big,
            tWobig.astype(cdt), tbobig)


def embedding_lookup(tables, ids):
    """EmbeddingLayer(..., squeeze_dim=True): gather + concat (plain JAX glue)."""
    return jnp.concatenate([tables[i][ids[:, i]] for i in range(len(tables))], axis=-1)


def mmoe_reference(embed_x, raw_params):
    """Pure-JAX reference mirroring the PyTorch forward (eval mode), unfused."""
    (eW1, eB1, eS1, eT1, eW2, eB2, eS2, eT2,
     gW, gB, gS, gT, tW1, tB1, tS1, tT1, tWo, tBo) = raw_params
    n_expert, n_task = eW1.shape[0], gW.shape[0]
    x = embed_x.astype(jnp.float32)

    expert_outs = []
    for e in range(n_expert):
        h = jnp.maximum((x @ eW1[e] + eB1[e]) * eS1[e] + eT1[e], 0.0)
        h = jnp.maximum((h @ eW2[e] + eB2[e]) * eS2[e] + eT2[e], 0.0)
        expert_outs.append(h)
    expert_outs = jnp.stack(expert_outs, axis=1)                        # (B, E, H2)

    ys = []
    for t in range(n_task):
        g = (x @ gW[t] + gB[t]) * gS[t] + gT[t]
        g = jax.nn.softmax(g, axis=1)                                   # (B, E)
        pooled = jnp.sum(g[:, :, None] * expert_outs, axis=1)
        th = jnp.maximum((pooled @ tW1[t] + tB1[t]) * tS1[t] + tT1[t], 0.0)
        y = jax.nn.sigmoid(th @ tWo[t] + tBo[t])
        ys.append(jnp.clip(y, CLIP_MIN, CLIP_MAX))
    return jnp.concatenate(ys, axis=1)


if __name__ == "__main__":
    # Config: 4 sparse features, embed_dim=8 each -> input_dims = 32
    # n_expert=4, expert dims=[32,16], 2 classification tasks, tower dims=[8]
    B = 64
    n_features = 4
    embed_dim = 8
    vocab_sizes = [10, 20, 30, 40]
    d_in = n_features * embed_dim
    n_expert = 4
    n_task = 2
    expert_dims = (32, 16)
    tower_hidden = 8

    key = jax.random.PRNGKey(0)
    k_ids, k_emb, k_params = jax.random.split(key, 3)

    # Raw sparse-feature ids (the PyTorch model's `x` dict of id tensors).
    ids = jnp.stack(
        [jax.random.randint(jax.random.fold_in(k_ids, i), (B,), 0, vocab_sizes[i])
         for i in range(n_features)], axis=1).astype(jnp.int32)          # (B, 4)

    # Embedding tables (glue) + parameters (raw for the reference, fused for the kernel).
    tables = [0.1 * jax.random.normal(jax.random.fold_in(k_emb, i),
                                      (vocab_sizes[i], embed_dim), jnp.float32)
              for i in range(n_features)]
    raw_params = build_raw_params(k_params, d_in, n_expert, n_task, expert_dims, tower_hidden)

    embed_x = embedding_lookup(tables, ids)                              # (B, 32)
    ref = mmoe_reference(embed_x, raw_params)

    # 1) f32-weight kernel: tight check of the fusion math (BN fold, block-diag,
    #    packed matmul softmax, gate-sum-folded towers). B=64 -> one tile, grid=(1,).
    fused_f32 = fuse_params(raw_params, n_expert, n_task, expert_dims, tower_hidden,
                            compute_dtype=jnp.float32)
    out_f32 = jax.block_until_ready(mmoe_forward(embed_x, fused_f32))
    assert out_f32.shape == (B, n_task), out_f32.shape
    assert jnp.allclose(out_f32, ref, atol=1e-3, rtol=1e-3), (out_f32, ref)

    # 2) bf16-weight kernel: the performance configuration (MXU-native operands,
    #    f32 accumulation / sigmoid / clip / output). Looser tolerance for bf16 rounding.
    fused_bf16 = fuse_params(raw_params, n_expert, n_task, expert_dims, tower_hidden,
                             compute_dtype=jnp.bfloat16)
    out_bf16 = jax.block_until_ready(mmoe_forward(embed_x, fused_bf16))
    assert out_bf16.shape == (B, n_task), out_bf16.shape
    assert jnp.allclose(out_bf16, ref, atol=3e-2), (out_bf16, ref)

    print("KERNEL_OK")
</pallas_src>

<mosaic_0001>
module attributes {stable_mosaic.version = 11 : i64} {
  func.func @mmoe_kernel(%arg0: i32, %arg1: memref<64x32xf32, #tpu.memory_space<vmem>>, %arg2: memref<32x136xf32, #tpu.memory_space<vmem>>, %arg3: memref<1x136xf32, #tpu.memory_space<vmem>>, %arg4: memref<128x128xf32, #tpu.memory_space<vmem>>, %arg5: memref<1x128xf32, #tpu.memory_space<vmem>>, %arg6: memref<8x128xf32, #tpu.memory_space<vmem>>, %arg7: memref<8x128xf32, #tpu.memory_space<vmem>>, %arg8: memref<128x16xf32, #tpu.memory_space<vmem>>, %arg9: memref<1x16xf32, #tpu.memory_space<vmem>>, %arg10: memref<16x2xf32, #tpu.memory_space<vmem>>, %arg11: memref<1x2xf32, #tpu.memory_space<vmem>>, %arg12: memref<64x2xf32, #tpu.memory_space<vmem>>) attributes {dimension_semantics = [#tpu.dimension_semantics<parallel>], iteration_bounds = array<i64: 1>, scalar_prefetch = 0 : i64, scratch_operands = 0 : i64, tpu.core_type = #tpu.core_type<tc>, window_params = [{transform_indices = @transform_0, window_bounds = array<i64: 64, 32>}, {pipeline_mode = #tpu.pipeline_mode<synchronous>, transform_indices = @transform_1, window_bounds = array<i64: 32, 136>}, {pipeline_mode = #tpu.pipeline_mode<synchronous>, transform_indices = @transform_2, window_bounds = array<i64: 1, 136>}, {pipeline_mode = #tpu.pipeline_mode<synchronous>, transform_indices = @transform_3, window_bounds = array<i64: 128, 128>}, {pipeline_mode = #tpu.pipeline_mode<synchronous>, transform_indices = @transform_4, window_bounds = array<i64: 1, 128>}, {pipeline_mode = #tpu.pipeline_mode<synchronous>, transform_indices = @transform_5, window_bounds = array<i64: 8, 128>}, {pipeline_mode = #tpu.pipeline_mode<synchronous>, transform_indices = @transform_6, window_bounds = array<i64: 8, 128>}, {pipeline_mode = #tpu.pipeline_mode<synchronous>, transform_indices = @transform_7, window_bounds = array<i64: 128, 16>}, {pipeline_mode = #tpu.pipeline_mode<synchronous>, transform_indices = @transform_8, window_bounds = array<i64: 1, 16>}, {pipeline_mode = #tpu.pipeline_mode<synchronous>, transform_indices = @transform_9, window_bounds = array<i64: 16, 2>}, {pipeline_mode = #tpu.pipeline_mode<synchronous>, transform_indices = @transform_10, window_bounds = array<i64: 1, 2>}, {transform_indices = @transform_11, window_bounds = array<i64: 64, 2>}]} {
    %c0 = arith.constant 0 : index
    %c0_0 = arith.constant 0 : index
    %0 = vector.load %arg2[%c0, %c0_0] : memref<32x136xf32, #tpu.memory_space<vmem>>, vector<32x136xf32>
    %c0_1 = arith.constant 0 : index
    %c0_2 = arith.constant 0 : index
    %1 = vector.load %arg1[%c0_1, %c0_2] : memref<64x32xf32, #tpu.memory_space<vmem>>, vector<64x32xf32>
    %cst = arith.constant dense<0.000000e+00> : vector<64x136xf32>
    %2 = tpu.matmul %1, %0, %cst {dimension_numbers = #tpu.dot_dimension_numbers<[1], [0], [0], [1], [0, 0, 1, 1], [], []>} : vector<64x32xf32>, vector<32x136xf32>, vector<64x136xf32> -> vector<64x136xf32>
    %c0_3 = arith.constant 0 : index
    %c0_4 = arith.constant 0 : index
    %3 = vector.load %arg3[%c0_3, %c0_4] : memref<1x136xf32, #tpu.memory_space<vmem>>, vector<1x136xf32>
    %4 = vector.broadcast %3 : vector<1x136xf32> to vector<64x136xf32>
    %5 = arith.addf %2, %4 : vector<64x136xf32>
    %6 = vector.extract_strided_slice %5 {offsets = [0, 0], sizes = [64, 128], strides = [1, 1]} : vector<64x136xf32> to vector<64x128xf32>
    %cst_5 = arith.constant 0.000000e+00 : f32
    %7 = vector.broadcast %cst_5 : f32 to vector<64x128xf32>
    %8 = arith.maximumf %6, %7 : vector<64x128xf32>
    %9 = vector.extract_strided_slice %5 {offsets = [0, 128], sizes = [64, 8], strides = [1, 1]} : vector<64x136xf32> to vector<64x8xf32>
    %c0_6 = arith.constant 0 : index
    %c0_7 = arith.constant 0 : index
    %10 = vector.load %arg4[%c0_6, %c0_7] : memref<128x128xf32, #tpu.memory_space<vmem>>, vector<128x128xf32>
    %cst_8 = arith.constant dense<0.000000e+00> : vector<64x128xf32>
    %11 = tpu.matmul %8, %10, %cst_8 {dimension_numbers = #tpu.dot_dimension_numbers<[1], [0], [0], [1], [0, 0, 1, 1], [], []>} : vector<64x128xf32>, vector<128x128xf32>, vector<64x128xf32> -> vector<64x128xf32>
    %c0_9 = arith.constant 0 : index
    %c0_10 = arith.constant 0 : index
    %12 = vector.load %arg5[%c0_9, %c0_10] : memref<1x128xf32, #tpu.memory_space<vmem>>, vector<1x128xf32>
    %13 = vector.broadcast %12 : vector<1x128xf32> to vector<64x128xf32>
    %14 = arith.addf %11, %13 : vector<64x128xf32>
    %cst_11 = arith.constant 0.000000e+00 : f32
    %15 = vector.broadcast %cst_11 : f32 to vector<64x128xf32>
    %16 = arith.maximumf %14, %15 : vector<64x128xf32>
    %cst_12 = arith.constant dense<0xFF800000> : vector<64xf32>
    %17 = vector.multi_reduction <maximumf>, %9, %cst_12 [1] : vector<64x8xf32> to vector<64xf32>
    %18 = vector.shape_cast %17 : vector<64xf32> to vector<64x1xf32>
    %19 = vector.broadcast %18 : vector<64x1xf32> to vector<64x8xf32>
    %20 = arith.subf %9, %19 : vector<64x8xf32>
    %21 = math.exp %20 : vector<64x8xf32>
    %c0_13 = arith.constant 0 : index
    %c0_14 = arith.constant 0 : index
    %22 = vector.load %arg6[%c0_13, %c0_14] : memref<8x128xf32, #tpu.memory_space<vmem>>, vector<8x128xf32>
    %cst_15 = arith.constant dense<0.000000e+00> : vector<64x128xf32>
    %23 = tpu.matmul %21, %22, %cst_15 {dimension_numbers = #tpu.dot_dimension_numbers<[1], [0], [0], [1], [0, 0, 1, 1], [], []>} : vector<64x8xf32>, vector<8x128xf32>, vector<64x128xf32> -> vector<64x128xf32>
    %c0_16 = arith.constant 0 : index
    %c0_17 = arith.constant 0 : index
    %24 = vector.load %arg7[%c0_16, %c0_17] : memref<8x128xf32, #tpu.memory_space<vmem>>, vector<8x128xf32>
    %cst_18 = arith.constant dense<0.000000e+00> : vector<64x128xf32>
    %25 = tpu.matmul %21, %24, %cst_18 {dimension_numbers = #tpu.dot_dimension_numbers<[1], [0], [0], [1], [0, 0, 1, 1], [], []>} : vector<64x8xf32>, vector<8x128xf32>, vector<64x128xf32> -> vector<64x128xf32>
    %26 = arith.mulf %16, %23 : vector<64x128xf32>
    %27 = tpu.reciprocal %25 {approx = true} : vector<64x128xf32> -> vector<64x128xf32>
    %28 = arith.mulf %26, %27 : vector<64x128xf32>
    %c0_19 = arith.constant 0 : index
    %c0_20 = arith.constant 0 : index
    %29 = vector.load %arg8[%c0_19, %c0_20] : memref<128x16xf32, #tpu.memory_space<vmem>>, vector<128x16xf32>
    %cst_21 = arith.constant dense<0.000000e+00> : vector<64x16xf32>
    %30 = tpu.matmul %28, %29, %cst_21 {dimension_numbers = #tpu.dot_dimension_numbers<[1], [0], [0], [1], [0, 0, 1, 1], [], []>} : vector<64x128xf32>, vector<128x16xf32>, vector<64x16xf32> -> vector<64x16xf32>
    %c0_22 = arith.constant 0 : index
    %c0_23 = arith.constant 0 : index
    %31 = vector.load %arg9[%c0_22, %c0_23] : memref<1x16xf32, #tpu.memory_space<vmem>>, vector<1x16xf32>
    %32 = vector.broadcast %31 : vector<1x16xf32> to vector<64x16xf32>
    %33 = arith.addf %30, %32 : vector<64x16xf32>
    %cst_24 = arith.constant 0.000000e+00 : f32
    %34 = vector.broadcast %cst_24 : f32 to vector<64x16xf32>
    %35 = arith.maximumf %33, %34 : vector<64x16xf32>
    %c0_25 = arith.constant 0 : index
    %c0_26 = arith.constant 0 : index
    %36 = vector.load %arg10[%c0_25, %c0_26] : memref<16x2xf32, #tpu.memory_space<vmem>>, vector<16x2xf32>
    %cst_27 = arith.constant dense<0.000000e+00> : vector<64x2xf32>
    %37 = tpu.matmul %35, %36, %cst_27 {dimension_numbers = #tpu.dot_dimension_numbers<[1], [0], [0], [1], [0, 0, 1, 1], [], []>} : vector<64x16xf32>, vector<16x2xf32>, vector<64x2xf32> -> vector<64x2xf32>
    %c0_28 = arith.constant 0 : index
    %c0_29 = arith.constant 0 : index
    %38 = vector.load %arg11[%c0_28, %c0_29] : memref<1x2xf32, #tpu.memory_space<vmem>>, vector<1x2xf32>
    %39 = vector.broadcast %38 : vector<1x2xf32> to vector<64x2xf32>
    %40 = arith.addf %37, %39 : vector<64x2xf32>
    %41 = arith.negf %40 : vector<64x2xf32>
    %42 = math.exp %41 : vector<64x2xf32>
    %cst_30 = arith.constant 1.000000e+00 : f32
    %43 = vector.broadcast %cst_30 : f32 to vector<64x2xf32>
    %44 = arith.addf %43, %42 : vector<64x2xf32>
    %45 = arith.divf %43, %44 : vector<64x2xf32>
    %cst_31 = arith.constant 1.000000e-15 : f32
    %cst_32 = arith.constant 1.000000e+00 : f32
    %46 = vector.broadcast %cst_31 : f32 to vector<64x2xf32>
    %47 = arith.maximumf %46, %45 : vector<64x2xf32>
    %48 = vector.broadcast %cst_32 : f32 to vector<64x2xf32>
    %49 = arith.minimumf %48, %47 : vector<64x2xf32>
    %c0_33 = arith.constant 0 : index
    %c0_34 = arith.constant 0 : index
    %50 = vector.load %arg12[%c0_33, %c0_34] : memref<64x2xf32, #tpu.memory_space<vmem>>, vector<64x2xf32>
    tpu.vector_store %arg12[%c0_33, %c0_34], %49 {strides = array<i32>} : memref<64x2xf32, #tpu.memory_space<vmem>>, vector<64x2xf32>,
    return
  }
  func.func @transform_0(%arg0: i32) -> (i32, i32) {
    %c0_i32 = arith.constant 0 : i32
    %c0_i32_0 = arith.constant 0 : i32
    return %arg0, %c0_i32 : i32, i32
  }
  func.func @transform_1(%arg0: i32) -> (i32, i32) {
    %c0_i32 = arith.constant 0 : i32
    %c0_i32_0 = arith.constant 0 : i32
    %c0_i32_1 = arith.constant 0 : i32
    return %c0_i32, %c0_i32_0 : i32, i32
  }
  func.func @transform_2(%arg0: i32) -> (i32, i32) {
    %c0_i32 = arith.constant 0 : i32
    %c0_i32_0 = arith.constant 0 : i32
    %c0_i32_1 = arith.constant 0 : i32
    return %c0_i32, %c0_i32_0 : i32, i32
  }
  func.func @transform_3(%arg0: i32) -> (i32, i32) {
    %c0_i32 = arith.constant 0 : i32
    %c0_i32_0 = arith.constant 0 : i32
    %c0_i32_1 = arith.constant 0 : i32
    return %c0_i32, %c0_i32_0 : i32, i32
  }
  func.func @transform_4(%arg0: i32) -> (i32, i32) {
    %c0_i32 = arith.constant 0 : i32
    %c0_i32_0 = arith.constant 0 : i32
    %c0_i32_1 = arith.constant 0 : i32
    return %c0_i32, %c0_i32_0 : i32, i32
  }
  func.func @transform_5(%arg0: i32) -> (i32, i32) {
    %c0_i32 = arith.constant 0 : i32
    %c0_i32_0 = arith.constant 0 : i32
    %c0_i32_1 = arith.constant 0 : i32
    return %c0_i32, %c0_i32_0 : i32, i32
  }
  func.func @transform_6(%arg0: i32) -> (i32, i32) {
    %c0_i32 = arith.constant 0 : i32
    %c0_i32_0 = arith.constant 0 : i32
    %c0_i32_1 = arith.constant 0 : i32
    return %c0_i32, %c0_i32_0 : i32, i32
  }
  func.func @transform_7(%arg0: i32) -> (i32, i32) {
    %c0_i32 = arith.constant 0 : i32
    %c0_i32_0 = arith.constant 0 : i32
    %c0_i32_1 = arith.constant 0 : i32
    return %c0_i32, %c0_i32_0 : i32, i32
  }
  func.func @transform_8(%arg0: i32) -> (i32, i32) {
    %c0_i32 = arith.constant 0 : i32
    %c0_i32_0 = arith.constant 0 : i32
    %c0_i32_1 = arith.constant 0 : i32
    return %c0_i32, %c0_i32_0 : i32, i32
  }
  func.func @transform_9(%arg0: i32) -> (i32, i32) {
    %c0_i32 = arith.constant 0 : i32
    %c0_i32_0 = arith.constant 0 : i32
    %c0_i32_1 = arith.constant 0 : i32
    return %c0_i32, %c0_i32_0 : i32, i32
  }
  func.func @transform_10(%arg0: i32) -> (i32, i32) {
    %c0_i32 = arith.constant 0 : i32
    %c0_i32_0 = arith.constant 0 : i32
    %c0_i32_1 = arith.constant 0 : i32
    return %c0_i32, %c0_i32_0 : i32, i32
  }
  func.func @transform_11(%arg0: i32) -> (i32, i32) {
    %c0_i32 = arith.constant 0 : i32
    %c0_i32_0 = arith.constant 0 : i32
    return %arg0, %c0_i32 : i32, i32
  }
}

</mosaic_0001>

<bundles_post_ra>
// kernel: tpu_custom_call.1
= control target key start
LH: loop header
LB: loop body
LE: loop exit
PB: predicated region body
PF: predicated region fallthrough
CT: control target
= control target key end

     0   :  { %v1401_v3 = vmov 0.0   ;;  %vm66_vm0 = vcmask 261120   ;;  %v56_v45 = vlaneseq  ;;  %vm348_vm1 = vcmask 64512   ;;  %s1758_s1 = inlined_call_operand.vmem [shape: f32[32,136], index: 1, kind: input, shape index: {}]   ;;  %s1759_s3 = inlined_call_operand.vmem [shape: f32[128,128], index: 3, kind: input, shape index: {}]   ;;  %s1760_s0 = inlined_call_operand.vmem [shape: f32[64,32], index: 0, kind: input, shape index: {}]   ;;  %s1761_s2 = inlined_call_operand.vmem [shape: f32[1,136], index: 2, kind: input, shape index: {}]   ;;  %s1762_s5 = inlined_call_operand.vmem [shape: f32[8,128], index: 5, kind: input, shape index: {}]   ;;  %s1763_s6 = inlined_call_operand.vmem [shape: f32[8,128], index: 6, kind: input, shape index: {}]   ;;  %s1764_s7 = inlined_call_operand.vmem [shape: f32[128,16], index: 7, kind: input, shape index: {}]   ;;  %s1765_s4 = inlined_call_operand.vmem [shape: f32[1,128], index: 4, kind: input, shape index: {}]   ;;  %s1766_s9 = inlined_call_operand.vmem [shape: f32[16,2], index: 9, kind: input, shape index: {}]   ;;  %s1767_s8 = inlined_call_operand.vmem [shape: f32[1,16], index: 8, kind: input, shape index: {}]   ;;  %s1768_s10 = inlined_call_operand.vmem [shape: f32[1,2], index: 10, kind: input, shape index: {}]   ;;  %s1769_s11 = inlined_call_operand.vmem [shape: f32[64,2], index: 11, kind: output, shape index: {}]  }
   0x1   :  { %v39_v0 = vld [vmem:[%s1758_s1 + $0x8] sm:$0xff]  ;;  %v41_v1 = vld [vmem:[%s1758_s1 + $0x18] sm:$0xff]  ;;  %v38_v2 = vld [vmem:[%s1758_s1] sm:$0xff]  ;;  %155 = vmatprep.mubr.f32.mxu0 %v1401_v3  ;;  %vm802_vm2 = vcmask 130048   ;;  %vm996_vm3 = vcmask 15360  }
   0x2   :  { %v1260_v4 = vpack.c.bf16 %v41_v1, %v39_v0  ;;  %v40_v5 = vld [vmem:[%s1758_s1 + $0x10] sm:$0xff]  ;;  %v43_v6 = vld [vmem:[%s1758_s1 + $0x28] sm:$0xff]  ;;  %v45_v7 = vld [vmem:[%s1758_s1 + $0x38] sm:$0xff]  ;;  %v57_v46 = vshrl.u32 %v56_v45, 7 }
   0x3   :  { %v1262_v8 = vpack.c.bf16 %v40_v5, %v38_v2  ;;  %v1264_v9 = vpack.c.bf16 %v45_v7, %v43_v6  ;;  %v42_v10 = vld [vmem:[%s1758_s1 + $0x20] sm:$0xff]  ;;  %v44_v11 = vld [vmem:[%s1758_s1 + $0x30] sm:$0xff]  ;;  %v213_v14 = vld [vmem:[%s1759_s3 + $0x8] sm:$0xff] }
   0x4   :  { %1261 = vmatprep.subr.bf16.mxu0 %v1260_v4  ;;  %v1266_v12 = vpack.c.bf16 %v44_v11, %v42_v10  ;;  %v212_v13 = vld [vmem:[%s1759_s3] sm:$0xff]  ;;  %v214_v16 = vld [vmem:[%s1759_s3 + $0x10] sm:$0xff]  ;;  %v215_v17 = vld [vmem:[%s1759_s3 + $0x18] sm:$0xff]  ;;  %v58_v47 = vsub.s32 0, %v57_v46  ;;  %v62_v49 = vsub.s32 1, %v57_v46 }
   0x5   :  { %1263 = vmatpush1.bf16.msra.mxu0 %v1262_v8  ;;  %v1268_v15 = vpack.c.bf16 %v213_v14, %v212_v13  ;;  %v1272_v18 = vpack.c.bf16 %v215_v17, %v214_v16  ;;  %v216_v19 = vld [vmem:[%s1759_s3 + $0x20] sm:$0xff]  ;;  %v217_v20 = vld [vmem:[%s1759_s3 + $0x28] sm:$0xff]  ;;  %v218_v23 = vld [vmem:[%s1759_s3 + $0x30] sm:$0xff] }
   0x6   :  { %1265 = vmatprep.subr.bf16.mxu0 %v1264_v9  ;;  %v46_v21 = vld [vmem:[%s1760_s0] sm:$0xff]  ;;  %v1276_v22 = vpack.c.bf16 %v217_v20, %v216_v19  ;;  %v219_v24 = vld [vmem:[%s1759_s3 + $0x38] sm:$0xff]  ;;  %v47_v25 = vld [vmem:[%s1760_s0 + $0x8] sm:$0xff] }
   0x7   :  { %1269 = vmatprep.subr.bf16.mxu1 %v1268_v15  ;;  %v1280_v26 = vpack.c.bf16 %v219_v24, %v218_v23  ;;  %v220_v27 = vld [vmem:[%s1759_s3 + $0x40] sm:$0xff]  ;;  %v221_v28 = vld [vmem:[%s1759_s3 + $0x48] sm:$0xff]  ;;  %v48_v29 = vld [vmem:[%s1760_s0 + $0x10] sm:$0xff] }
   0x8   :  { %1271 = vmatpush3.bf16.msra.mxu1 %v1268_v15  ;;  %v1284_v30 = vpack.c.bf16 %v221_v28, %v220_v27  ;;  %v222_v31 = vld [vmem:[%s1759_s3 + $0x50] sm:$0xff]  ;;  %v223_v32 = vld [vmem:[%s1759_s3 + $0x58] sm:$0xff]  ;;  %v50_v35 = vld [vmem:[%s1760_s0 + $0x20] sm:$0xff] }
   0x9   :  { %1267 = vmatpush1.bf16.msra.mxu0 %v1266_v12  ;;  %1273 = vmatprep.subr.bf16.mxu1 %v1272_v18  ;;  %v49_v33 = vld [vmem:[%s1760_s0 + $0x18] sm:$0xff]  ;;  %v1288_v34 = vpack.c.bf16 %v223_v32, %v222_v31  ;;  %v51_v36 = vld [vmem:[%s1760_s0 + $0x28] sm:$0xff]  ;;  %v52_v37 = vld [vmem:[%s1760_s0 + $0x30] sm:$0xff] }
   0xa   :  { %v53_v38 = vld [vmem:[%s1760_s0 + $0x38] sm:$0xff]  ;;  %v224_v39 = vld [vmem:[%s1759_s3 + $0x60] sm:$0xff]  ;;  %v225_v40 = vld [vmem:[%s1759_s3 + $0x68] sm:$0xff] }
   0xb   :  { %v1292_v41 = vpack.c.bf16 %v225_v40, %v224_v39  ;;  %v226_v42 = vld [vmem:[%s1759_s3 + $0x70] sm:$0xff]  ;;  %v227_v43 = vld [vmem:[%s1759_s3 + $0x78] sm:$0xff]  ;;  %v54_v48 = vld [vmem:[%s1761_s2] sm:$0x3] }
   0xc   :  { %1009 = vmatmul.mubr.msk.f32.vlgmr.msra.gmra.mrb[0].mxu0 %vm66_vm0, %v46_v21  ;;  %1275 = vmatpush3.bf16.msra.mxu1 %v1272_v18  ;;  %v1296_v44 = vpack.c.bf16 %v227_v43, %v226_v42  ;;  %v59_v50 = vrot.slane %v54_v48, %v58_v47  ;;  %v1577_v51 = vrot.slane %v54_v48, %v62_v49  ;;  %v397_v31 = vld [vmem:[%s1762_s5] sm:$0xff]  ;;  %v658_v39 = vld [vmem:[%s1764_s7 + $0x8] sm:$0xff] }
   0xd   :  { %161 = vmatprep.mubr.f32.mxu0 %v1401_v3  ;;  %1277 = vmatprep.subr.bf16.mxu1 %v1276_v22 }
   0xe   :  { %1172 = vmatprep.subr.mxu0 %v397_v31 }
   0xf   :  { %1173 = vmatpush3.msra.mxu0 %v397_v31 }
  0x10   :  { %1010 = vmatmul.mubr.msk.f32.gmra.mrb[2].mxu0 %vm66_vm0, %v47_v25  ;;  %1279 = vmatpush3.bf16.msra.mxu1 %v1276_v22 }
  0x11   :  { %167 = vmatprep.mubr.f32.mxu0 %v1401_v3  ;;  %1281 = vmatprep.subr.bf16.mxu1 %v1280_v26 }
  0x14   :  { %1011 = vmatmul.mubr.msk.f32.gmra.mrb[4].mxu0 %vm66_vm0, %v48_v29  ;;  %1283 = vmatpush3.bf16.msra.mxu1 %v1280_v26 }
  0x15   :  { %173 = vmatprep.mubr.f32.mxu0 %v1401_v3  ;;  %1285 = vmatprep.subr.bf16.mxu1 %v1284_v30 }
  0x18   :  { %1012 = vmatmul.mubr.msk.f32.gmra.mrb[6].mxu0 %vm66_vm0, %v49_v33  ;;  %1287 = vmatpush3.bf16.msra.mxu1 %v1284_v30 }
  0x19   :  { %179 = vmatprep.mubr.f32.mxu0 %v1401_v3  ;;  %1289 = vmatprep.subr.bf16.mxu1 %v1288_v34 }
  0x1c   :  { %1013 = vmatmul.mubr.msk.f32.gmra.mrb[8].mxu0 %vm66_vm0, %v50_v35  ;;  %1291 = vmatpush3.bf16.msra.mxu1 %v1288_v34 }
  0x1d   :  { %185 = vmatprep.mubr.f32.mxu0 %v1401_v3  ;;  %1293 = vmatprep.subr.bf16.mxu1 %v1292_v41 }
  0x20   :  { %1014 = vmatmul.mubr.msk.f32.gmra.mrb[10].mxu0 %vm66_vm0, %v51_v36  ;;  %1295 = vmatpush3.bf16.msra.mxu1 %v1292_v41 }
  0x21   :  { %191 = vmatprep.mubr.f32.mxu0 %v1401_v3  ;;  %1297 = vmatprep.subr.bf16.mxu1 %v1296_v44 }
  0x24   :  { %1015 = vmatmul.mubr.msk.f32.gmra.mrb[12].mxu0 %vm66_vm0, %v52_v37  ;;  %1299 = vmatpush3.bf16.msra.mxu1 %v1296_v44  ;;  %v527_v37 = vld [vmem:[%s1763_s6] sm:$0xff] }
  0x25   :  { %197 = vmatprep.mubr.f32.mxu0 %v1401_v3  ;;  %1186 = vmatprep.subr.mxu1 %v527_v37 }
  0x28   :  { %1016 = vmatmul.mubr.msk.f32.gmra.mrb[14].mxu0 %vm66_vm0, %v53_v38  ;;  %v657_v38 = vld [vmem:[%s1764_s7] sm:$0xff] }
  0x29   :  { %v1300_v40 = vpack.c.bf16 %v658_v39, %v657_v38  ;;  %v1017_v38 = vld [vmem:[%s1765_s4] ss:$0 sm:$0xff] }
  0x2b   :  { %1301 = vmatprep.subr.bf16.mxu0 %v1300_v40 }
  0xdf   :  { %v157_v52 = vpop.f32.mrb[0].mxu0 }
  0xe0   :  { %v159_v53 = vpop.f32.mrb[1].mxu0  ;;  %v158_v54 = vadd.f32 %v157_v52, %v59_v50 }
  0xe1   :  { %v1580_v55 = vadd.f32 %v159_v53, %v1577_v51 }
  0xe2   :  { %v204_v56 = vmax.f32 %v158_v54, 0.0  ;;  %v659_v54 = vld [vmem:[%s1764_s7 + $0x10] sm:$0xff] }
  0xe3   :  { %v163_v57 = vpop.f32.mrb[2].mxu0  ;;  %v349_v58 = vsel %vm348_vm1, %v1580_v55, -inf }
  0xe4   :  { %v164_v59 = vadd.f32 %v163_v57, %v59_v50  ;;  %v165_v60 = vpop.f32.mrb[3].mxu0  ;;  %350 = vmax.xlane.f32.xlu0 %v349_v58  ;;  %1160 = vmatprep.mubr.f32.mxu1 %v204_v56 }
  0xe5   :  { %v1585_v61 = vadd.f32 %v165_v60, %v1577_v51 }
  0xe6   :  { %v205_v62 = vmax.f32 %v164_v59, 0.0 }
  0xe7   :  { %v169_v63 = vpop.f32.mrb[4].mxu0  ;;  %v352_v0 = vsel %vm348_vm1, %v1585_v61, -inf }
  0xe8   :  { %v170_v1 = vadd.f32 %v169_v63, %v59_v50  ;;  %v171_v2 = vpop.f32.mrb[5].mxu0  ;;  %353 = vmax.xlane.f32.xlu0 %v352_v0  ;;  %1161 = vmatmul.mubr.f32.vlgmr.msra.gmra.mrb[0].mxu1 %v205_v62  ;;  %v662_v62 = vld [vmem:[%s1764_s7 + $0x28] sm:$0xff] }
  0xe9   :  { %v1590_v3 = vadd.f32 %v171_v2, %v1577_v51  ;;  %1187 = vmatpush3.msra.mxu1 %v527_v37 }
  0xea   :  { %v206_v4 = vmax.f32 %v170_v1, 0.0 }
  0xeb   :  { %v175_v5 = vpop.f32.mrb[6].mxu0  ;;  %v355_v6 = vsel %vm348_vm1, %v1590_v3, -inf }
  0xec   :  { %v176_v7 = vadd.f32 %v175_v5, %v59_v50  ;;  %v177_v8 = vpop.f32.mrb[7].mxu0  ;;  %356 = vmax.xlane.f32.xlu1 %v355_v6  ;;  %1163 = vmatprep.mubr.f32.mxu1 %v206_v4  ;;  %v663_v4 = vld [vmem:[%s1764_s7 + $0x30] sm:$0xff]  ;;  %v664_v5 = vld [vmem:[%s1764_s7 + $0x38] sm:$0xff] }
  0xed   :  { %v1595_v9 = vadd.f32 %v177_v8, %v1577_v51  ;;  %v1312_v8 = vpack.c.bf16 %v664_v5, %v663_v4 }
  0xee   :  { %v207_v10 = vmax.f32 %v176_v7, 0.0 }
  0xef   :  { %v181_v11 = vpop.f32.mrb[8].mxu0  ;;  %v358_v12 = vsel %vm348_vm1, %v1595_v9, -inf }
  0xf0   :  { %v182_v13 = vadd.f32 %v181_v11, %v59_v50  ;;  %v183_v14 = vpop.f32.mrb[9].mxu0  ;;  %359 = vmax.xlane.f32.xlu1 %v358_v12  ;;  %1164 = vmatmul.mubr.f32.gmra.mrb[2].mxu1 %v207_v10 }
  0xf1   :  { %v1600_v15 = vadd.f32 %v183_v14, %v1577_v51 }
  0xf2   :  { %v208_v16 = vmax.f32 %v182_v13, 0.0 }
  0xf3   :  { %v187_v17 = vpop.f32.mrb[10].mxu0  ;;  %v361_v18 = vsel %vm348_vm1, %v1600_v15, -inf }
  0xf4   :  { %v188_v19 = vadd.f32 %v187_v17, %v59_v50  ;;  %v189_v20 = vpop.f32.mrb[11].mxu0  ;;  %362 = vmax.xlane.f32.xlu0 %v361_v18  ;;  %1166 = vmatprep.mubr.f32.mxu1 %v208_v16 }
  0xf5   :  { %v1605_v21 = vadd.f32 %v189_v20, %v1577_v51 }
  0xf6   :  { %v209_v22 = vmax.f32 %v188_v19, 0.0 }
  0xf7   :  { %v193_v23 = vpop.f32.mrb[12].mxu0  ;;  %v364_v24 = vsel %vm348_vm1, %v1605_v21, -inf }
  0xf8   :  { %v194_v25 = vadd.f32 %v193_v23, %v59_v50  ;;  %v195_v26 = vpop.f32.mrb[13].mxu0  ;;  %365 = vmax.xlane.f32.xlu1 %v364_v24  ;;  %1167 = vmatmul.mubr.f32.gmra.mrb[4].mxu1 %v209_v22 }
  0xf9   :  { %v1610_v27 = vadd.f32 %v195_v26, %v1577_v51  ;;  %v665_v26 = vld [vmem:[%s1764_s7 + $0x40] sm:$0xff] }
  0xfa   :  { %v210_v28 = vmax.f32 %v194_v25, 0.0 }
  0xfb   :  { %v199_v29 = vpop.f32.mrb[14].mxu0  ;;  %v367_v30 = vsel %vm348_vm1, %v1610_v27, -inf }
  0xfc   :  { %v200_v32 = vadd.f32 %v199_v29, %v59_v50  ;;  %v201_v33 = vpop.f32.mrb[15].mxu0  ;;  %368 = vmax.xlane.f32.xlu0 %v367_v30  ;;  %1169 = vmatprep.mubr.f32.mxu1 %v210_v28  ;;  %v667_v29 = vld [vmem:[%s1764_s7 + $0x50] sm:$0xff]  ;;  %v668_v30 = vld [vmem:[%s1764_s7 + $0x58] sm:$0xff] }
  0xfd   :  { %v1618_v34 = vadd.f32 %v201_v33, %v1577_v51  ;;  %v1320_v31 = vpack.c.bf16 %v668_v30, %v667_v29  ;;  %v670_v33 = vld [vmem:[%s1764_s7 + $0x68] sm:$0xff] }
  0xfe   :  { %v211_v35 = vmax.f32 %v200_v32, 0.0  ;;  %v669_v32 = vld [vmem:[%s1764_s7 + $0x60] sm:$0xff] }
  0xff   :  { %v370_v36 = vsel %vm348_vm1, %v1618_v34, -inf }
 0x100   :  { %371 = vmax.xlane.f32.xlu1 %v370_v36  ;;  %1170 = vmatmul.mubr.f32.gmra.mrb[6].mxu1 %v211_v35  ;;  %v671_v35 = vld [vmem:[%s1764_s7 + $0x70] sm:$0xff]  ;;  %v672_v36 = vld [vmem:[%s1764_s7 + $0x78] sm:$0xff] }
 0x101   :  { %v1328_v37 = vpack.c.bf16 %v672_v36, %v671_v35 }
 0x171   :  { %v351_v41 = vpop.xlane.xlu0 %350 }
 0x172   :  { %v373_v42 = vsub.f32 %v1580_v55, %v351_v41  ;;  %v660_v55 = vld [vmem:[%s1764_s7 + $0x18] sm:$0xff] }
 0x173   :  { %v1304_v58 = vpack.c.bf16 %v660_v55, %v659_v54 }
 0x174   :  { %v381_v43 = vmul.f32 1.442695, %v373_v42 }
 0x175   :  { %v354_v44 = vpop.xlane.xlu0 %353 }
 0x176   :  { %1337 = vpow2.f32 %v381_v43  ;;  %v374_v45 = vsub.f32 %v1585_v61, %v354_v44  ;;  %v661_v61 = vld [vmem:[%s1764_s7 + $0x20] sm:$0xff] }
 0x177   :  { %v1308_v1 = vpack.c.bf16 %v662_v62, %v661_v61 }
 0x178   :  { %v383_v46 = vmul.f32 1.442695, %v374_v45 }
 0x179   :  { %v357_v47 = vpop.xlane.xlu1 %356 }
 0x17a   :  { %1339 = vpow2.f32 %v383_v46  ;;  %v375_v48 = vsub.f32 %v1590_v3, %v357_v47 }
 0x17c   :  { %v385_v49 = vmul.f32 1.442695, %v375_v48 }
 0x17d   :  { %v360_v50 = vpop.xlane.xlu1 %359 }
 0x17e   :  { %1341 = vpow2.f32 %v385_v49  ;;  %v376_v51 = vsub.f32 %v1595_v9, %v360_v50 }
 0x180   :  { %v1338_v52 = vpop.eup %1337  ;;  %v387_v53 = vmul.f32 1.442695, %v376_v51 }
 0x181   :  { %1174 = vmatprep.mubr.msk.f32.mxu0 %vm348_vm1, %v1338_v52  ;;  %v363_v56 = vpop.xlane.xlu0 %362  ;;  %1188 = vmatprep.mubr.msk.f32.mxu1 %vm348_vm1, %v1338_v52 }
 0x182   :  { %1343 = vpow2.f32 %v387_v53  ;;  %v377_v57 = vsub.f32 %v1600_v15, %v363_v56 }
 0x184   :  { %v1340_v59 = vpop.eup %1339  ;;  %v389_v60 = vmul.f32 1.442695, %v377_v57 }
 0x185   :  { %v366_v63 = vpop.xlane.xlu1 %365  ;;  %1175 = vmatmul.mubr.msk.f32.vlgmr.msra.gmra.mrb[16].mxu0 %vm348_vm1, %v1340_v59  ;;  %1189 = vmatmul.mubr.msk.f32.vlgmr.msra.gmra.mrb[8].mxu1 %vm348_vm1, %v1340_v59 }
 0x186   :  { %1345 = vpow2.f32 %v389_v60  ;;  %v378_v0 = vsub.f32 %v1605_v21, %v366_v63  ;;  %1303 = vmatpush3.bf16.msra.mxu0 %v1300_v40 }
 0x187   :  { %1305 = vmatprep.subr.bf16.mxu0 %v1304_v58 }
 0x188   :  { %v1342_v2 = vpop.eup %1341  ;;  %v391_v3 = vmul.f32 1.442695, %v378_v0 }
 0x189   :  { %1177 = vmatprep.mubr.msk.f32.mxu0 %vm348_vm1, %v1342_v2  ;;  %v369_v6 = vpop.xlane.xlu0 %368  ;;  %1191 = vmatprep.mubr.msk.f32.mxu1 %vm348_vm1, %v1342_v2 }
 0x18a   :  { %1347 = vpow2.f32 %v391_v3  ;;  %v379_v7 = vsub.f32 %v1610_v27, %v369_v6  ;;  %1307 = vmatpush3.bf16.msra.mxu0 %v1304_v58  ;;  %v666_v27 = vld [vmem:[%s1764_s7 + $0x48] sm:$0xff] }
 0x18b   :  { %1309 = vmatprep.subr.bf16.mxu0 %v1308_v1  ;;  %v1316_v28 = vpack.c.bf16 %v666_v27, %v665_v26 }
 0x18c   :  { %v1344_v9 = vpop.eup %1343  ;;  %v393_v10 = vmul.f32 1.442695, %v379_v7 }
 0x18d   :  { %v372_v11 = vpop.xlane.xlu1 %371  ;;  %1178 = vmatmul.mubr.msk.f32.gmra.mrb[18].mxu0 %vm348_vm1, %v1344_v9  ;;  %1192 = vmatmul.mubr.msk.f32.gmra.mrb[10].mxu1 %vm348_vm1, %v1344_v9 }
 0x18e   :  { %1349 = vpow2.f32 %v393_v10  ;;  %v380_v12 = vsub.f32 %v1618_v34, %v372_v11  ;;  %1311 = vmatpush3.bf16.msra.mxu0 %v1308_v1  ;;  %v1324_v34 = vpack.c.bf16 %v670_v33, %v669_v32  ;;  %v794_v32 = vld [vmem:[%s1766_s9 + $0x8] sm:$0xff] }
 0x18f   :  { %1313 = vmatprep.subr.bf16.mxu0 %v1312_v8 }
 0x190   :  { %v1346_v13 = vpop.eup %1345  ;;  %v395_v14 = vmul.f32 1.442695, %v380_v12 }
 0x191   :  { %1180 = vmatprep.mubr.msk.f32.mxu0 %vm348_vm1, %v1346_v13  ;;  %1194 = vmatprep.mubr.msk.f32.mxu1 %vm348_vm1, %v1346_v13 }
 0x192   :  { %1351 = vpow2.f32 %v395_v14  ;;  %1315 = vmatpush3.bf16.msra.mxu0 %v1312_v8 }
 0x193   :  { %1317 = vmatprep.subr.bf16.mxu0 %v1316_v28 }
 0x194   :  { %v1348_v15 = vpop.eup %1347 }
 0x195   :  { %1181 = vmatmul.mubr.msk.f32.gmra.mrb[20].mxu0 %vm348_vm1, %v1348_v15  ;;  %1195 = vmatmul.mubr.msk.f32.gmra.mrb[12].mxu1 %vm348_vm1, %v1348_v15 }
 0x196   :  { %1319 = vmatpush3.bf16.msra.mxu0 %v1316_v28 }
 0x197   :  { %1321 = vmatprep.subr.bf16.mxu0 %v1320_v31 }
 0x198   :  { %v1350_v16 = vpop.eup %1349 }
 0x199   :  { %1183 = vmatprep.mubr.msk.f32.mxu0 %vm348_vm1, %v1350_v16  ;;  %1197 = vmatprep.mubr.msk.f32.mxu1 %vm348_vm1, %v1350_v16 }
 0x19a   :  { %1323 = vmatpush3.bf16.msra.mxu0 %v1320_v31  ;;  %v793_v31 = vld [vmem:[%s1766_s9] sm:$0xff] }
 0x19b   :  { %1325 = vmatprep.subr.bf16.mxu0 %v1324_v34  ;;  %v1332_v33 = vpack.c.bf16 %v794_v32, %v793_v31 }
 0x19c   :  { %v1352_v17 = vpop.eup %1351 }
 0x19d   :  { %1184 = vmatmul.mubr.msk.f32.gmra.mrb[22].mxu0 %vm348_vm1, %v1352_v17  ;;  %1198 = vmatmul.mubr.msk.f32.gmra.mrb[14].mxu1 %vm348_vm1, %v1352_v17 }
 0x19e   :  { %1327 = vmatpush3.bf16.msra.mxu0 %v1324_v34  ;;  %1333 = vmatprep.subr.bf16.mxu1 %v1332_v33  ;;  %v1034_v34 = vld [vmem:[%s1767_s8] ss:$0 sm:$0xff] }
 0x19f   :  { %1329 = vmatprep.subr.bf16.mxu0 %v1328_v37  ;;  %1335 = vmatpush3.bf16.msra.mxu1 %v1332_v33 }
 0x1a2   :  { %1331 = vmatpush3.bf16.msra.mxu0 %v1328_v37 }
 0x1bb   :  { %v1162_v18 = vpop.f32.mrb[0].mxu1 }
 0x1bc   :  { %v301_v19 = vpop.f32.mrb[1].mxu1  ;;  %v307_v39 = vadd.f32 %v1162_v18, %v1017_v38 }
 0x1bd   :  { %v302_v40 = vadd.f32 %v1017_v38, %v301_v19 }
 0x1be   :  { %v341_v41 = vmax.f32 %v307_v39, 0.0 }
 0x1bf   :  { %v340_v42 = vmax.f32 %v302_v40, 0.0 }
 0x1c3   :  { %v1165_v20 = vpop.f32.mrb[2].mxu1 }
 0x1c4   :  { %v311_v21 = vpop.f32.mrb[3].mxu1  ;;  %v317_v49 = vadd.f32 %v1165_v20, %v1017_v38 }
 0x1c5   :  { %v312_v50 = vadd.f32 %v1017_v38, %v311_v21 }
 0x1c6   :  { %v343_v51 = vmax.f32 %v317_v49, 0.0 }
 0x1c7   :  { %v342_v52 = vmax.f32 %v312_v50, 0.0 }
 0x1cb   :  { %v1168_v22 = vpop.f32.mrb[4].mxu1 }
 0x1cc   :  { %v321_v23 = vpop.f32.mrb[5].mxu1  ;;  %v327_v60 = vadd.f32 %v1168_v22, %v1017_v38 }
 0x1cd   :  { %v322_v62 = vadd.f32 %v1017_v38, %v321_v23 }
 0x1ce   :  { %v345_v1 = vmax.f32 %v327_v60, 0.0 }
 0x1cf   :  { %v344_v2 = vmax.f32 %v322_v62, 0.0 }
 0x1d3   :  { %v1673_v24 = vpop.f32.mrb[6].mxu1 }
 0x1d4   :  { %v1675_v25 = vpop.f32.mrb[7].mxu1  ;;  %v337_v10 = vadd.f32 %v1673_v24, %v1017_v38 }
 0x1d5   :  { %v332_v12 = vadd.f32 %v1017_v38, %v1675_v25 }
 0x1d6   :  { %v347_v15 = vmax.f32 %v337_v10, 0.0 }
 0x1d7   :  { %v346_v16 = vmax.f32 %v332_v12, 0.0 }
 0x258   :  { %v1176_v43 = vpop.f32.mrb[16].mxu0  ;;  %v1190_v44 = vpop.f32.mrb[8].mxu1 }
 0x259   :  { %v634_v45 = vmul.f32 %v1176_v43, %v341_v41  ;;  %1353 = vrcp.f32 %v1190_v44  ;;  %v488_v46 = vpop.f32.mrb[17].mxu0  ;;  %v594_v47 = vpop.f32.mrb[9].mxu1 }
 0x25a   :  { %v633_v48 = vmul.f32 %v488_v46, %v340_v42  ;;  %1355 = vrcp.f32 %v594_v47 }
 0x260   :  { %v1179_v53 = vpop.f32.mrb[18].mxu0  ;;  %v1193_v54 = vpop.f32.mrb[10].mxu1 }
 0x261   :  { %v636_v55 = vmul.f32 %v1179_v53, %v343_v51  ;;  %1357 = vrcp.f32 %v1193_v54  ;;  %v498_v56 = vpop.f32.mrb[19].mxu0  ;;  %v604_v57 = vpop.f32.mrb[11].mxu1 }
 0x262   :  { %v635_v58 = vmul.f32 %v498_v56, %v342_v52  ;;  %1359 = vrcp.f32 %v604_v57 }
 0x263   :  { %v1354_v59 = vpop.eup %1353 }
 0x264   :  { %v1356_v61 = vpop.eup %1355  ;;  %v650_v63 = vmul.f32 %v1354_v59, %v634_v45  ;;  %v1035_v59 = vld [vmem:[%s1768_s10] ss:$0 sm:$0xff] }
 0x265   :  { %v649_v0 = vmul.f32 %v1356_v61, %v633_v48 }
 0x267   :  { %1232 = vmatprep.mubr.f32.mxu0 %v649_v0 }
 0x268   :  { %v1182_v3 = vpop.f32.mrb[20].mxu0  ;;  %v1196_v4 = vpop.f32.mrb[12].mxu1  ;;  %1233 = vmatmul.mubr.f32.vlgmr.msra.gmra.mrb[24].mxu0 %v650_v63 }
 0x269   :  { %v638_v5 = vmul.f32 %v1182_v3, %v345_v1  ;;  %1361 = vrcp.f32 %v1196_v4  ;;  %v508_v6 = vpop.f32.mrb[21].mxu0  ;;  %v614_v7 = vpop.f32.mrb[13].mxu1 }
 0x26a   :  { %v637_v8 = vmul.f32 %v508_v6, %v344_v2  ;;  %1363 = vrcp.f32 %v614_v7 }
 0x26b   :  { %v1358_v9 = vpop.eup %1357 }
 0x26c   :  { %v1360_v11 = vpop.eup %1359  ;;  %v652_v13 = vmul.f32 %v1358_v9, %v636_v55 }
 0x26d   :  { %v651_v14 = vmul.f32 %v1360_v11, %v635_v58 }
 0x26f   :  { %1235 = vmatprep.mubr.f32.mxu0 %v651_v14 }
 0x270   :  { %v1185_v17 = vpop.f32.mrb[22].mxu0  ;;  %v1199_v18 = vpop.f32.mrb[14].mxu1  ;;  %1236 = vmatmul.mubr.f32.gmra.mrb[26].mxu0 %v652_v13 }
 0x271   :  { %v640_v19 = vmul.f32 %v1185_v17, %v347_v15  ;;  %1365 = vrcp.f32 %v1199_v18  ;;  %v518_v20 = vpop.f32.mrb[23].mxu0  ;;  %v624_v21 = vpop.f32.mrb[15].mxu1 }
 0x272   :  { %v639_v22 = vmul.f32 %v518_v20, %v346_v16  ;;  %1367 = vrcp.f32 %v624_v21 }
 0x273   :  { %v1362_v23 = vpop.eup %1361 }
 0x274   :  { %v1364_v26 = vpop.eup %1363  ;;  %v654_v24 = vmul.f32 %v1362_v23, %v638_v5 }
 0x275   :  { %v653_v27 = vmul.f32 %v1364_v26, %v637_v8 }
 0x277   :  { %1238 = vmatprep.mubr.f32.mxu0 %v653_v27 }
 0x278   :  { %1239 = vmatmul.mubr.f32.gmra.mrb[28].mxu0 %v654_v24 }
 0x27b   :  { %v1366_v25 = vpop.eup %1365 }
 0x27c   :  { %v1368_v28 = vpop.eup %1367  ;;  %v656_v29 = vmul.f32 %v1366_v25, %v640_v19 }
 0x27d   :  { %v655_v30 = vmul.f32 %v1368_v28, %v639_v22 }
 0x27f   :  { %1241 = vmatprep.mubr.f32.mxu0 %v655_v30 }
 0x280   :  { %1242 = vmatmul.mubr.f32.gmra.mrb[30].mxu0 %v656_v29 }
 0x33b   :  { %v1234_v35 = vpop.f32.mrb[24].mxu0 }
 0x33c   :  { %v752_v36 = vadd.f32 %v1234_v35, %v1034_v34  ;;  %v746_v37 = vpop.f32.mrb[25].mxu0 }
 0x33d   :  { %v747_v38 = vadd.f32 %v1034_v34, %v746_v37 }
 0x33e   :  { %v786_v40 = vmax.f32 %v752_v36, 0.0 }
 0x33f   :  { %v785_v39 = vmax.f32 %v747_v38, 0.0 }
 0x341   :  { %1248 = vmatprep.mubr.msk.f32.mxu1 %vm802_vm2, %v785_v39 }
 0x342   :  { %1249 = vmatmul.mubr.msk.f32.vlgmr.msra.gmra.mrb[16].mxu1 %vm802_vm2, %v786_v40 }
 0x343   :  { %v1237_v41 = vpop.f32.mrb[26].mxu0 }
 0x344   :  { %v762_v42 = vadd.f32 %v1237_v41, %v1034_v34  ;;  %v756_v43 = vpop.f32.mrb[27].mxu0 }
 0x345   :  { %v757_v44 = vadd.f32 %v1034_v34, %v756_v43 }
 0x346   :  { %v788_v46 = vmax.f32 %v762_v42, 0.0 }
 0x347   :  { %v787_v45 = vmax.f32 %v757_v44, 0.0 }
 0x349   :  { %1251 = vmatprep.mubr.msk.f32.mxu1 %vm802_vm2, %v787_v45 }
 0x34a   :  { %1252 = vmatmul.mubr.msk.f32.gmra.mrb[18].mxu1 %vm802_vm2, %v788_v46 }
 0x34b   :  { %v1240_v47 = vpop.f32.mrb[28].mxu0 }
 0x34c   :  { %v772_v48 = vadd.f32 %v1240_v47, %v1034_v34  ;;  %v766_v49 = vpop.f32.mrb[29].mxu0 }
 0x34d   :  { %v767_v50 = vadd.f32 %v1034_v34, %v766_v49 }
 0x34e   :  { %v790_v52 = vmax.f32 %v772_v48, 0.0 }
 0x34f   :  { %v789_v51 = vmax.f32 %v767_v50, 0.0 }
 0x351   :  { %1254 = vmatprep.mubr.msk.f32.mxu1 %vm802_vm2, %v789_v51 }
 0x352   :  { %1255 = vmatmul.mubr.msk.f32.gmra.mrb[20].mxu1 %vm802_vm2, %v790_v52 }
 0x353   :  { %v1243_v53 = vpop.f32.mrb[30].mxu0 }
 0x354   :  { %v782_v54 = vadd.f32 %v1243_v53, %v1034_v34  ;;  %v776_v55 = vpop.f32.mrb[31].mxu0 }
 0x355   :  { %v777_v56 = vadd.f32 %v1034_v34, %v776_v55 }
 0x356   :  { %v792_v58 = vmax.f32 %v782_v54, 0.0 }
 0x357   :  { %v791_v57 = vmax.f32 %v777_v56, 0.0 }
 0x359   :  { %1257 = vmatprep.mubr.msk.f32.mxu1 %vm802_vm2, %v791_v57 }
 0x35a   :  { %1258 = vmatmul.mubr.msk.f32.gmra.mrb[22].mxu1 %vm802_vm2, %v792_v58 }
 0x415   :  { %v1250_v60 = vpop.f32.mrb[16].mxu1 }
 0x416   :  { %v899_v61 = vadd.f32 %v1250_v60, %v1035_v59  ;;  %v893_v62 = vpop.f32.mrb[17].mxu1 }
 0x417   :  { %v894_v63 = vadd.f32 %v1035_v59, %v893_v62 }
 0x418   :  { %v1045_v0 = vmul.f32 -1.442695, %v899_v61 }
 0x419   :  { %v1044_v1 = vmul.f32 -1.442695, %v894_v63 }
 0x41a   :  { %1369 = vpow2.f32 %v1045_v0 }
 0x41b   :  { %1371 = vpow2.f32 %v1044_v1 }
 0x41d   :  { %v1253_v2 = vpop.f32.mrb[18].mxu1 }
 0x41e   :  { %v909_v3 = vadd.f32 %v1253_v2, %v1035_v59  ;;  %v903_v4 = vpop.f32.mrb[19].mxu1 }
 0x41f   :  { %v904_v5 = vadd.f32 %v1035_v59, %v903_v4 }
 0x420   :  { %v1047_v6 = vmul.f32 -1.442695, %v909_v3 }
 0x421   :  { %v1046_v7 = vmul.f32 -1.442695, %v904_v5 }
 0x422   :  { %1373 = vpow2.f32 %v1047_v6 }
 0x423   :  { %1375 = vpow2.f32 %v1046_v7 }
 0x424   :  { %v1370_v8 = vpop.eup %1369 }
 0x425   :  { %v1372_v9 = vpop.eup %1371  ;;  %v957_v10 = vadd.f32 1.0, %v1370_v8  ;;  %v1256_v11 = vpop.f32.mrb[20].mxu1 }
 0x426   :  { %v956_v12 = vadd.f32 1.0, %v1372_v9  ;;  %v919_v13 = vadd.f32 %v1256_v11, %v1035_v59  ;;  %v913_v14 = vpop.f32.mrb[21].mxu1 }
 0x427   :  { %1377 = vrcp.f32 %v957_v10  ;;  %v914_v15 = vadd.f32 %v1035_v59, %v913_v14 }
 0x428   :  { %1379 = vrcp.f32 %v956_v12  ;;  %v1049_v16 = vmul.f32 -1.442695, %v919_v13 }
 0x429   :  { %v1048_v17 = vmul.f32 -1.442695, %v914_v15 }
 0x42a   :  { %1381 = vpow2.f32 %v1049_v16 }
 0x42b   :  { %1383 = vpow2.f32 %v1048_v17 }
 0x42c   :  { %v1374_v18 = vpop.eup %1373 }
 0x42d   :  { %v1376_v19 = vpop.eup %1375  ;;  %v959_v20 = vadd.f32 1.0, %v1374_v18  ;;  %v1259_v21 = vpop.f32.mrb[22].mxu1 }
 0x42e   :  { %v958_v22 = vadd.f32 1.0, %v1376_v19  ;;  %v929_v23 = vadd.f32 %v1259_v21, %v1035_v59  ;;  %v923_v26 = vpop.f32.mrb[23].mxu1 }
 0x42f   :  { %1385 = vrcp.f32 %v959_v20  ;;  %v924_v24 = vadd.f32 %v1035_v59, %v923_v26 }
 0x430   :  { %1387 = vrcp.f32 %v958_v22  ;;  %v1051_v27 = vmul.f32 -1.442695, %v929_v23 }
 0x431   :  { %v1378_v25 = vpop.eup %1377  ;;  %v1050_v28 = vmul.f32 -1.442695, %v924_v24 }
 0x432   :  { %v1380_v29 = vpop.eup %1379  ;;  %v981_v30 = vmax.f32 %v1378_v25, 1e-15  ;;  %1389 = vpow2.f32 %v1051_v27 }
 0x433   :  { %v980_v31 = vmax.f32 %v1380_v29, 1e-15  ;;  %1391 = vpow2.f32 %v1050_v28 }
 0x434   :  { %v1382_v32 = vpop.eup %1381  ;;  %v989_v33 = vmin.f32 %v981_v30, 1.0 }
 0x435   :  { %v1384_v34 = vpop.eup %1383  ;;  %v988_v35 = vmin.f32 %v980_v31, 1.0  ;;  %v961_v36 = vadd.f32 1.0, %v1382_v32 }
 0x436   :  { %998 = vst.msk [vmem:[%s1769_s11 + $0x8] sm:$0xff] %vm996_vm3, %v989_v33  ;;  %v960_v37 = vadd.f32 1.0, %v1384_v34 }
 0x437   :  { %997 = vst.msk [vmem:[%s1769_s11] sm:$0xff] %vm996_vm3, %v988_v35  ;;  %1393 = vrcp.f32 %v961_v36 }
 0x438   :  { %1395 = vrcp.f32 %v960_v37 }
 0x439   :  { %v1386_v38 = vpop.eup %1385 }
 0x43a   :  { %v1388_v39 = vpop.eup %1387  ;;  %v983_v40 = vmax.f32 %v1386_v38, 1e-15 }
 0x43b   :  { %v982_v41 = vmax.f32 %v1388_v39, 1e-15 }
 0x43c   :  { %v1390_v42 = vpop.eup %1389  ;;  %v991_v43 = vmin.f32 %v983_v40, 1.0 }
 0x43d   :  { %v1392_v44 = vpop.eup %1391  ;;  %v990_v45 = vmin.f32 %v982_v41, 1.0  ;;  %v963_v46 = vadd.f32 1.0, %v1390_v42 }
 0x43e   :  { %1000 = vst.msk [vmem:[%s1769_s11 + $0x18] sm:$0xff] %vm996_vm3, %v991_v43  ;;  %v962_v47 = vadd.f32 1.0, %v1392_v44 }
 0x43f   :  { %999 = vst.msk [vmem:[%s1769_s11 + $0x10] sm:$0xff] %vm996_vm3, %v990_v45  ;;  %1397 = vrcp.f32 %v963_v46 }
 0x440   :  { %1399 = vrcp.f32 %v962_v47 }
 0x441   :  { %v1394_v48 = vpop.eup %1393 }
 0x442   :  { %v1396_v49 = vpop.eup %1395  ;;  %v985_v50 = vmax.f32 %v1394_v48, 1e-15 }
 0x443   :  { %v984_v51 = vmax.f32 %v1396_v49, 1e-15 }
 0x444   :  { %v993_v52 = vmin.f32 %v985_v50, 1.0 }
 0x445   :  { %v992_v53 = vmin.f32 %v984_v51, 1.0 }
 0x446   :  { %1002 = vst.msk [vmem:[%s1769_s11 + $0x28] sm:$0xff] %vm996_vm3, %v993_v52 }
 0x447   :  { %1001 = vst.msk [vmem:[%s1769_s11 + $0x20] sm:$0xff] %vm996_vm3, %v992_v53 }
 0x449   :  { %v1398_v54 = vpop.eup %1397 }
 0x44a   :  { %v1400_v55 = vpop.eup %1399  ;;  %v987_v56 = vmax.f32 %v1398_v54, 1e-15 }
 0x44b   :  { %v986_v57 = vmax.f32 %v1400_v55, 1e-15 }
 0x44c   :  { %v995_v58 = vmin.f32 %v987_v56, 1.0 }
 0x44d   :  { %v994_v59 = vmin.f32 %v986_v57, 1.0 }
 0x44e   :  { %1004 = vst.msk [vmem:[%s1769_s11 + $0x38] sm:$0xff] %vm996_vm3, %v995_v58 }
 0x44f   :  { %1003 = vst.msk [vmem:[%s1769_s11 + $0x30] sm:$0xff] %vm996_vm3, %v994_v59 }

</bundles_post_ra>
